<compile_context>
chip_gen: v5e
topology: v5e:2x2
jax: 0.10.0
libtpu: 0.0.40
codegen_flags: <defaults>
</compile_context>

<pallas_src>
import functools
import math

import numpy as np
import jax
import jax.numpy as jnp
from jax.experimental import pallas as pl
from jax.experimental.pallas import tpu as pltpu

EPSILON = 1e-5


# -----------------------------------------------------------------------------
# Deterministic parameter construction (host-side numpy).
# -----------------------------------------------------------------------------
def _build_istft_params(frame_len, window="sqrthann", round_pow_of_two=True,
                        normalized=False):
    """Full windowed iDFT kernel Kfull (2B, B) and window win (B,), float64."""
    # TODO(synk): only window='sqrthann' + mode='librosa' (the module defaults)
    # are constructed here; other windows / kaldi mode only change this table.
    assert window == "sqrthann", "only sqrthann window implemented"
    n = np.arange(frame_len, dtype=np.float64)
    hann = 0.5 - 0.5 * np.cos(2.0 * np.pi * n / frame_len)   # periodic hann
    win = np.sqrt(hann)
    B = 2 ** math.ceil(math.log2(frame_len)) if round_pow_of_two else frame_len
    if B != frame_len:                      # librosa mode: center-pad window
        lpad = (B - frame_len) // 2
        win = np.pad(win, (lpad, B - frame_len - lpad))
    scale = 1.0 / (B ** 0.5) if normalized else 1.0 / B      # inverse kernel
    m = np.arange(B, dtype=np.float64)
    ang = 2.0 * np.pi * np.outer(m, m) / B                   # [freq m, sample k]
    Kfull = np.concatenate([np.cos(ang) * scale, -np.sin(ang) * scale],
                           axis=0) * win[None, :]            # (2B, B)
    return Kfull, win, B


def _build_fused_kernel(frame_len, frame_hop, onesided=True, window="sqrthann",
                        round_pow_of_two=True, normalized=False,
                        dtype=jnp.bfloat16):
    """Fold conjugate symmetry into K and lay it out sample-major.

    Returns (Kr (Bp, nb), Ki (Bp, nb), win (B,) f64, B, R, nb) where
    Bp = ceil(B/hop)*hop and nb is the number of (onesided) frequency bins.
    """
    Kfull, win, B = _build_istft_params(frame_len, window=window,
                                        round_pow_of_two=round_pow_of_two,
                                        normalized=normalized)
    if onesided:
        nb = B // 2 + 1
        Kr, Ki = Kfull[:B], Kfull[B:]
        Kr_f, Ki_f = Kr[:nb].copy(), Ki[:nb].copy()
        mirror = np.arange(1, B // 2)                 # bins with a mirror image
        Kr_f[mirror] += Kr[B - mirror]                # real: + mirrored rows
        Ki_f[mirror] -= Ki[B - mirror]                # imag: - mirrored rows
        Kmat = np.concatenate([Kr_f, Ki_f], axis=0)   # (2*nb, B)
    else:
        nb = B
        Kmat = Kfull                                  # (2B, B)
    R = int(math.ceil(B / frame_hop))                 # hop-sized taps per frame
    Bp = R * frame_hop
    if Bp != B:                                       # hop does not divide B
        Kmat = np.pad(Kmat, ((0, 0), (0, Bp - B)))
    K_sc = Kmat.T                                     # (Bp, 2*nb) sample-major
    kr = jnp.asarray(K_sc[:, :nb], dtype)
    ki = jnp.asarray(K_sc[:, nb:], dtype)
    return kr, ki, win, B, R, nb


def _build_inv_norm_blocks(win, T, hop, B, R, tc, num_chunks):
    """1/(OLA(win**2)+eps) as (4, hop, tc) f32 blocks.

    block 0: exact for chunk 0            block 1: interior per-row profile
    block 2: exact for chunk nc-2         block 3: exact for chunk nc-1
    Interior chunks only contain fully-overlapped columns, so block 1 is exact
    for them; all boundary columns live in chunks {0, nc-2, nc-1}.
    """
    winsq = np.asarray(win, np.float64) ** 2
    Bp = R * hop
    winsq_pad = np.zeros(Bp, np.float64)
    winsq_pad[:B] = winsq
    wtile = winsq_pad.reshape(R, hop)                        # [tap r, row u]
    T_pad = num_chunks * tc
    j = np.arange(T_pad)
    norm_cols = np.zeros((hop, T_pad), np.float64)
    for r in range(R):                                       # tiny host loop
        in_range = ((j - r) >= 0) & ((j - r) < T)
        norm_cols += np.where(in_range[None, :], wtile[r][:, None], 0.0)
    inv_full = 1.0 / (norm_cols + EPSILON)                   # (hop, T_pad)
    inv_int = 1.0 / (wtile.sum(axis=0) + EPSILON)            # (hop,)
    blocks = np.empty((4, hop, tc), np.float64)
    blocks[0] = inv_full[:, :tc]
    blocks[1] = inv_int[:, None]
    blocks[2] = inv_full[:, max(num_chunks - 2, 0) * tc:][:, :tc]
    blocks[3] = inv_full[:, (num_chunks - 1) * tc:][:, :tc]
    return jnp.asarray(blocks, jnp.float32)


def _vmem_estimate(nb, Bp, hop, tc, in_bytes, k_bytes):
    """Rough live-set estimate (double-buffered BlockSpec operands + temps)."""
    est = 2 * 2 * nb * tc * in_bytes      # real + imag tiles, double-buffered
    est += 2 * 2 * Bp * nb * k_bytes      # Kr + Ki (constant index, 2 buffers)
    est += 2 * hop * tc * 4               # inv-norm block
    est += 2 * hop * tc * 4               # output tile
    est += hop * 128 * 4                  # carry scratch
    est += Bp * tc * 4                    # fused f32 matmul result
    est += 2 * hop * tc * 4               # accumulator / temporaries headroom
    return est


# -----------------------------------------------------------------------------
# Pallas kernel: one (batch b, frame-chunk t) grid step.
# -----------------------------------------------------------------------------
def _istft_ola_kernel(real_ref, imag_ref, kr_ref, ki_ref, inv_ref, out_ref,
                      carry_ref, *, taps, hop, tc, t_valid, needs_mask,
                      mm_dtype):
    """real_ref/imag_ref (nb, tc)  onesided spectrum for tc frames
       kr_ref/ki_ref     (Bp, nb)  windowed iDFT kernel, sample-major
       inv_ref           (hop, tc) 1/(OLA(win**2)+eps) block for this chunk
       out_ref           (hop, tc) output tile; sample (t*tc + j)*hop + u -> [u, j]
       carry_ref         (hop,128) f32 scratch: tap spill into the next chunk's
                                   first R-1 columns (persists along chunks)."""
    t = pl.program_id(1)

    @pl.when(t == 0)
    def _reset_carry():
        carry_ref[...] = jnp.zeros_like(carry_ref)

    carry_in = carry_ref[...]                                  # (hop, 128)

    real = real_ref[...]
    imag = imag_ref[...]
    if needs_mask:
        # Zero frames beyond T (partial last block / clamped padded chunks).
        nb = real.shape[0]
        col = jax.lax.broadcasted_iota(jnp.int32, (nb, tc), 1)
        valid = (t * tc + col) < t_valid
        real = jnp.where(valid, real, 0.0)
        imag = jnp.where(valid, imag, 0.0)
    real = real.astype(mm_dtype)
    imag = imag.astype(mm_dtype)

    # One fused MXU matmul per half: (Bp, nb) @ (nb, tc) -> (Bp, tc), f32 acc.
    fused = (jnp.dot(kr_ref[...], real, preferred_element_type=jnp.float32) +
             jnp.dot(ki_ref[...], imag, preferred_element_type=jnp.float32))

    # Overlap-add: tap r of frame j lands at output column j + r.
    acc_first = fused[0:hop, 0:128] + carry_in                 # (hop, 128)
    acc_rest = fused[0:hop, 128:] if tc > 128 else None        # (hop, tc-128)
    carry_out = jnp.zeros((hop, 128), jnp.float32)
    lane = jax.lax.broadcasted_iota(jnp.int32, (hop, 128), 1)
    for r in range(1, taps):              # static, tiny: taps = ceil(B/hop)
        f_r = fused[r * hop:(r + 1) * hop, :]                  # sublane slice
        rolled = pltpu.roll(f_r, shift=r, axis=1)              # XLU lane roll
        head = rolled[:, 0:128]
        keep = lane >= r
        acc_first = acc_first + jnp.where(keep, head, 0.0)
        carry_out = carry_out + jnp.where(keep, 0.0, head)     # -> next chunk
        if tc > 128:
            acc_rest = acc_rest + rolled[:, 128:]              # always in-chunk
    carry_ref[...] = carry_out

    inv = inv_ref[...]
    out_ref[:, 0:128] = acc_first * inv[:, 0:128]
    if tc > 128:
        out_ref[:, 128:] = acc_rest * inv[:, 128:]


# -----------------------------------------------------------------------------
# Wrapper (glue): parameter prep, pallas_call, final crop.
# -----------------------------------------------------------------------------
def istft_forward(transform, frame_len=16, frame_hop=8, input="complex",
                  onesided=True, center=False, window="sqrthann",
                  round_pow_of_two=True, normalized=False,
                  frame_chunk=1024, matmul_dtype=jnp.bfloat16):
    """JAX/Pallas equivalent of iSTFT.forward. Returns wav (N, S)."""
    if input == "polar":
        mag, phase = transform
        real = mag * jnp.cos(phase)
        imag = mag * jnp.sin(phase)
    elif input == "complex":
        real, imag = transform
    elif input == "real":
        real, imag = transform[..., 0], transform[..., 1]
    else:
        raise ValueError(f"Unknown output format: {input}")

    if real.ndim == 2:
        real, imag = real[None], imag[None]

    kr, ki, win, B, R, nbins = _build_fused_kernel(
        frame_len, frame_hop, onesided=onesided, window=window,
        round_pow_of_two=round_pow_of_two, normalized=normalized,
        dtype=matmul_dtype)

    N, nb_in, T = real.shape
    assert nb_in == nbins, "bad number of freq bins"
    hop = frame_hop
    Bp = R * hop
    assert R <= 128, "frame overlap (B/hop) must fit in one 128-lane slab"
    S = (T - 1) * hop + B                            # conv_transpose1d length

    # Frame-chunk (lane) width: multiple of 128 for dense, unmasked stores; big
    # enough to amortize per-grid-step overhead; auto-shrunk to the VMEM budget.
    in_bytes = jnp.dtype(real.dtype).itemsize
    k_bytes = jnp.dtype(matmul_dtype).itemsize
    tc = 128 * max(1, (int(frame_chunk) + 127) // 128)
    tc = min(tc, 128 * pl.cdiv(T + R - 1, 128))      # no wider than the output
    tc = max(tc, 128)
    vmem_budget = 36 * 2 ** 20                       # conservative across gens
    while tc > 128 and _vmem_estimate(nbins, Bp, hop, tc, in_bytes,
                                      k_bytes) > vmem_budget:
        tc = max(128, ((tc // 2) // 128) * 128)

    num_chunks = pl.cdiv(T + R - 1, tc)              # real output columns: T+R-1
    tin_chunks = max(1, pl.cdiv(T, tc))              # chunks with any input
    T_pad = num_chunks * tc
    needs_mask = (T % tc != 0) or (num_chunks != tin_chunks)

    inv_blocks = _build_inv_norm_blocks(win, T, hop, B, R, tc, num_chunks)

    tin_last = tin_chunks - 1
    nc = num_chunks

    def spec_in(b, t):
        # Clamp so padded tail chunks never index past the input; their stale
        # contents are zeroed by the in-kernel validity mask.
        return (b, 0, jnp.minimum(t, tin_last))

    def spec_inv(b, t):
        sel = jnp.where(t == 0, 0,
              jnp.where(t == nc - 1, 3,
              jnp.where(t == nc - 2, 2, 1)))
        return (sel, 0, 0)

    kernel = functools.partial(
        _istft_ola_kernel, taps=R, hop=hop, tc=tc, t_valid=T,
        needs_mask=needs_mask, mm_dtype=matmul_dtype)

    out = pl.pallas_call(
        kernel,
        out_shape=jax.ShapeDtypeStruct((N, hop, T_pad), jnp.float32),
        grid=(N, num_chunks),
        in_specs=[
            pl.BlockSpec((None, nbins, tc), spec_in),             # real
            pl.BlockSpec((None, nbins, tc), spec_in),             # imag
            pl.BlockSpec((Bp, nbins), lambda b, t: (0, 0)),       # Kr (resident)
            pl.BlockSpec((Bp, nbins), lambda b, t: (0, 0)),       # Ki (resident)
            pl.BlockSpec((None, hop, tc), spec_inv),              # 1/norm blocks
        ],
        out_specs=pl.BlockSpec((None, hop, tc), lambda b, t: (b, 0, t)),
        scratch_shapes=[pltpu.VMEM((hop, 128), jnp.float32)],     # carry
        compiler_params=pltpu.CompilerParams(
            dimension_semantics=("parallel", "arbitrary"),
            vmem_limit_bytes=48 * 2 ** 20),
    )(real, imag, kr, ki, inv_blocks)

    # out[n, u, j] holds wav sample j*hop + u  ->  (N, S)
    # TODO(synk): this transpose is one extra XLA pass over the waveform; for
    # hop >= 128 the kernel could emit lane-dense flat tiles directly instead.
    wav = jnp.transpose(out, (0, 2, 1)).reshape(N, T_pad * hop)[:, :S]
    if center:
        pad = B // 2
        wav = wav[:, pad:S - pad]
    return wav


# -----------------------------------------------------------------------------
# Pure numpy reference (mirrors the torch math) for verification.
# -----------------------------------------------------------------------------
def _numpy_reference(real, imag, frame_len, frame_hop):
    Kfull, win, B = _build_istft_params(frame_len)
    real = np.asarray(real, np.float64)
    imag = np.asarray(imag, np.float64)
    rev = np.arange(B // 2 - 1, 0, -1)
    real_full = np.concatenate([real, real[:, rev, :]], axis=1)
    imag_full = np.concatenate([imag, -imag[:, rev, :]], axis=1)
    packed = np.concatenate([real_full, imag_full], axis=1)        # (N, 2B, T)
    N, _, T = packed.shape
    S = (T - 1) * frame_hop + B
    frames = np.einsum("nct,ck->ntk", packed, Kfull)               # (N, T, B)
    acc = np.zeros((N, S), np.float64)
    norm = np.zeros((S,), np.float64)
    for t in range(T):
        acc[:, t * frame_hop:t * frame_hop + B] += frames[:, t]
        norm[t * frame_hop:t * frame_hop + B] += win ** 2
    return acc / (norm[None, :] + EPSILON)


if __name__ == "__main__":
    frame_len, frame_hop = 16, 8
    B = 2 ** math.ceil(math.log2(frame_len))      # FFT size = 16
    num_bins = B // 2 + 1                         # 9 (onesided)
    key = jax.random.PRNGKey(0)

    def run_case(T, N, frame_chunk, matmul_dtype, rtol, atol):
        k1, k2 = jax.random.split(jax.random.fold_in(key, T))
        real = jax.random.normal(k1, (N, num_bins, T), jnp.float32)
        imag = jax.random.normal(k2, (N, num_bins, T), jnp.float32)
        wav = istft_forward((real, imag), frame_len=frame_len,
                            frame_hop=frame_hop, input="complex",
                            frame_chunk=frame_chunk,
                            matmul_dtype=matmul_dtype)
        wav = jax.block_until_ready(wav)
        S = (T - 1) * frame_hop + B
        assert wav.shape == (N, S), wav.shape
        ref = _numpy_reference(real, imag, frame_len, frame_hop)
        np.testing.assert_allclose(np.asarray(wav), ref, rtol=rtol, atol=atol)

    # 1) Default path: bf16 MXU, one big lane-dense chunk, ragged last block.
    run_case(T=150, N=2, frame_chunk=1024, matmul_dtype=jnp.bfloat16,
             rtol=3e-2, atol=3e-2)
    # 2) f32 path, 4 chunks: exercises the cross-chunk carry, the resident
    #    interior inv-norm block, and the clamped fully-out-of-bounds tail chunk.
    run_case(T=384, N=2, frame_chunk=128, matmul_dtype=jnp.float32,
             rtol=1e-3, atol=2e-3)
    # 3) bf16 + multi-chunk carry.
    run_case(T=384, N=2, frame_chunk=128, matmul_dtype=jnp.bfloat16,
             rtol=3e-2, atol=3e-2)

    print("KERNEL_OK")
</pallas_src>

<mosaic_0001>
module attributes {stable_mosaic.version = 11 : i64} {
  func.func @_istft_ola_kernel(%arg0: i32, %arg1: i32, %arg2: memref<1x9x256xf32, #tpu.memory_space<vmem>>, %arg3: memref<1x9x256xf32, #tpu.memory_space<vmem>>, %arg4: memref<16x9xbf16, #tpu.memory_space<vmem>>, %arg5: memref<16x9xbf16, #tpu.memory_space<vmem>>, %arg6: memref<1x8x256xf32, #tpu.memory_space<vmem>>, %arg7: memref<1x8x256xf32, #tpu.memory_space<vmem>>, %arg8: memref<8x128xf32, #tpu.memory_space<vmem>>) attributes {dimension_semantics = [#tpu.dimension_semantics<parallel>, #tpu.dimension_semantics<arbitrary>], iteration_bounds = array<i64: 2, 1>, scalar_prefetch = 0 : i64, scratch_operands = 1 : i64, tpu.core_type = #tpu.core_type<tc>, window_params = [{transform_indices = @transform_0, window_bounds = array<i64: 1, 9, 256>}, {transform_indices = @transform_1, window_bounds = array<i64: 1, 9, 256>}, {pipeline_mode = #tpu.pipeline_mode<synchronous>, transform_indices = @transform_2, window_bounds = array<i64: 16, 9>}, {pipeline_mode = #tpu.pipeline_mode<synchronous>, transform_indices = @transform_3, window_bounds = array<i64: 16, 9>}, {transform_indices = @transform_4, window_bounds = array<i64: 1, 8, 256>}, {transform_indices = @transform_5, window_bounds = array<i64: 1, 8, 256>}]} {
    %c0_i32 = arith.constant 0 : i32
    %0 = arith.cmpi eq, %arg1, %c0_i32 : i32
    %1 = arith.extui %0 : i1 to i32
    %c0_i32_0 = arith.constant 0 : i32
    %2 = arith.cmpi ne, %1, %c0_i32_0 : i32
    scf.if %2 {
      %cst_29 = arith.constant 0.000000e+00 : f32
      %56 = vector.broadcast %cst_29 : f32 to vector<8x128xf32>
      %c0_30 = arith.constant 0 : index
      %c0_31 = arith.constant 0 : index
      %57 = vector.load %arg8[%c0_30, %c0_31] : memref<8x128xf32, #tpu.memory_space<vmem>>, vector<8x128xf32>
      tpu.vector_store %arg8[%c0_30, %c0_31], %56 {strides = array<i32>} : memref<8x128xf32, #tpu.memory_space<vmem>>, vector<8x128xf32>,
    } else {
    }
    %c0 = arith.constant 0 : index
    %c0_1 = arith.constant 0 : index
    %3 = vector.load %arg8[%c0, %c0_1] : memref<8x128xf32, #tpu.memory_space<vmem>>, vector<8x128xf32>
    %c0_2 = arith.constant 0 : index
    %c0_3 = arith.constant 0 : index
    %c0_4 = arith.constant 0 : index
    %4 = vector.load %arg2[%c0_2, %c0_3, %c0_4] : memref<1x9x256xf32, #tpu.memory_space<vmem>>, vector<1x9x256xf32>
    %5 = vector.shape_cast %4 : vector<1x9x256xf32> to vector<9x256xf32>
    %c0_5 = arith.constant 0 : index
    %c0_6 = arith.constant 0 : index
    %c0_7 = arith.constant 0 : index
    %6 = vector.load %arg3[%c0_5, %c0_6, %c0_7] : memref<1x9x256xf32, #tpu.memory_space<vmem>>, vector<1x9x256xf32>
    %7 = vector.shape_cast %6 : vector<1x9x256xf32> to vector<9x256xf32>
    %8 = tpu.iota {dimensions = array<i32: 1>} : vector<9x256xi32>
    %c256_i32 = arith.constant 256 : i32
    %9 = arith.muli %arg1, %c256_i32 : i32
    %10 = vector.broadcast %9 : i32 to vector<9x256xi32>
    %11 = arith.addi %10, %8 : vector<9x256xi32>
    %c150_i32 = arith.constant 150 : i32
    %12 = vector.broadcast %c150_i32 : i32 to vector<9x256xi32>
    %13 = arith.cmpi slt, %11, %12 : vector<9x256xi32>
    %cst = arith.constant 0.000000e+00 : f32
    %14 = vector.broadcast %cst : f32 to vector<9x256xf32>
    %15 = arith.select %13, %5, %14 : vector<9x256xi1>, vector<9x256xf32>
    %cst_8 = arith.constant 0.000000e+00 : f32
    %16 = vector.broadcast %cst_8 : f32 to vector<9x256xf32>
    %17 = arith.select %13, %7, %16 : vector<9x256xi1>, vector<9x256xf32>
    %18 = arith.truncf %15 : vector<9x256xf32> to vector<9x256xbf16>
    %19 = arith.truncf %17 : vector<9x256xf32> to vector<9x256xbf16>
    %c0_9 = arith.constant 0 : index
    %c0_10 = arith.constant 0 : index
    %20 = vector.load %arg4[%c0_9, %c0_10] : memref<16x9xbf16, #tpu.memory_space<vmem>>, vector<16x9xbf16>
    %cst_11 = arith.constant dense<0.000000e+00> : vector<16x256xf32>
    %21 = tpu.matmul %20, %18, %cst_11 {dimension_numbers = #tpu.dot_dimension_numbers<[1], [0], [0], [1], [0, 0, 1, 1], [], []>} : vector<16x9xbf16>, vector<9x256xbf16>, vector<16x256xf32> -> vector<16x256xf32>
    %c0_12 = arith.constant 0 : index
    %c0_13 = arith.constant 0 : index
    %22 = vector.load %arg5[%c0_12, %c0_13] : memref<16x9xbf16, #tpu.memory_space<vmem>>, vector<16x9xbf16>
    %cst_14 = arith.constant dense<0.000000e+00> : vector<16x256xf32>
    %23 = tpu.matmul %22, %19, %cst_14 {dimension_numbers = #tpu.dot_dimension_numbers<[1], [0], [0], [1], [0, 0, 1, 1], [], []>} : vector<16x9xbf16>, vector<9x256xbf16>, vector<16x256xf32> -> vector<16x256xf32>
    %24 = arith.addf %21, %23 : vector<16x256xf32>
    %25 = vector.extract_strided_slice %24 {offsets = [0, 0], sizes = [8, 128], strides = [1, 1]} : vector<16x256xf32> to vector<8x128xf32>
    %26 = arith.addf %25, %3 : vector<8x128xf32>
    %27 = vector.extract_strided_slice %24 {offsets = [0, 128], sizes = [8, 128], strides = [1, 1]} : vector<16x256xf32> to vector<8x128xf32>
    %cst_15 = arith.constant 0.000000e+00 : f32
    %28 = vector.broadcast %cst_15 : f32 to vector<8x128xf32>
    %29 = tpu.iota {dimensions = array<i32: 1>} : vector<8x128xi32>
    %30 = vector.extract_strided_slice %24 {offsets = [8, 0], sizes = [8, 256], strides = [1, 1]} : vector<16x256xf32> to vector<8x256xf32>
    %c1_i32 = arith.constant 1 : i32
    %31 = tpu.dynamic_rotate %30 by %c1_i32 dim 1 : vector<8x256xf32>, i32 -> vector<8x256xf32>
    %32 = vector.extract_strided_slice %31 {offsets = [0, 0], sizes = [8, 128], strides = [1, 1]} : vector<8x256xf32> to vector<8x128xf32>
    %c1_i32_16 = arith.constant 1 : i32
    %33 = vector.broadcast %c1_i32_16 : i32 to vector<8x128xi32>
    %34 = arith.cmpi sge, %29, %33 : vector<8x128xi32>
    %cst_17 = arith.constant 0.000000e+00 : f32
    %35 = vector.broadcast %cst_17 : f32 to vector<8x128xf32>
    %36 = arith.select %34, %32, %35 : vector<8x128xi1>, vector<8x128xf32>
    %37 = arith.addf %26, %36 : vector<8x128xf32>
    %cst_18 = arith.constant 0.000000e+00 : f32
    %38 = vector.broadcast %cst_18 : f32 to vector<8x128xf32>
    %39 = arith.select %34, %38, %32 : vector<8x128xi1>, vector<8x128xf32>
    %40 = arith.addf %28, %39 : vector<8x128xf32>
    %41 = vector.extract_strided_slice %31 {offsets = [0, 128], sizes = [8, 128], strides = [1, 1]} : vector<8x256xf32> to vector<8x128xf32>
    %42 = arith.addf %27, %41 : vector<8x128xf32>
    %c0_19 = arith.constant 0 : index
    %c0_20 = arith.constant 0 : index
    %43 = vector.load %arg8[%c0_19, %c0_20] : memref<8x128xf32, #tpu.memory_space<vmem>>, vector<8x128xf32>
    tpu.vector_store %arg8[%c0_19, %c0_20], %40 {strides = array<i32>} : memref<8x128xf32, #tpu.memory_space<vmem>>, vector<8x128xf32>,
    %c0_21 = arith.constant 0 : index
    %c0_22 = arith.constant 0 : index
    %c0_23 = arith.constant 0 : index
    %44 = vector.load %arg6[%c0_21, %c0_22, %c0_23] : memref<1x8x256xf32, #tpu.memory_space<vmem>>, vector<1x8x256xf32>
    %45 = vector.shape_cast %44 : vector<1x8x256xf32> to vector<8x256xf32>
    %46 = vector.extract_strided_slice %45 {offsets = [0, 0], sizes = [8, 128], strides = [1, 1]} : vector<8x256xf32> to vector<8x128xf32>
    %47 = arith.mulf %37, %46 : vector<8x128xf32>
    %c0_24 = arith.constant 0 : index
    %c0_25 = arith.constant 0 : index
    %c0_26 = arith.constant 0 : index
    %48 = vector.load %arg7[%c0_24, %c0_25, %c0_26] : memref<1x8x256xf32, #tpu.memory_space<vmem>>, vector<1x8x128xf32>
    %49 = vector.shape_cast %48 : vector<1x8x128xf32> to vector<8x128xf32>
    %50 = vector.shape_cast %47 : vector<8x128xf32> to vector<1x8x128xf32>
    tpu.vector_store %arg7[%c0_24, %c0_25, %c0_26], %50 {strides = array<i32>} : memref<1x8x256xf32, #tpu.memory_space<vmem>>, vector<1x8x128xf32>,
    %51 = vector.extract_strided_slice %45 {offsets = [0, 128], sizes = [8, 128], strides = [1, 1]} : vector<8x256xf32> to vector<8x128xf32>
    %52 = arith.mulf %42, %51 : vector<8x128xf32>
    %c0_27 = arith.constant 0 : index
    %c0_28 = arith.constant 0 : index
    %c128 = arith.constant 128 : index
    %53 = vector.load %arg7[%c0_27, %c0_28, %c128] : memref<1x8x256xf32, #tpu.memory_space<vmem>>, vector<1x8x128xf32>
    %54 = vector.shape_cast %53 : vector<1x8x128xf32> to vector<8x128xf32>
    %55 = vector.shape_cast %52 : vector<8x128xf32> to vector<1x8x128xf32>
    tpu.vector_store %arg7[%c0_27, %c0_28, %c128], %55 {strides = array<i32>} : memref<1x8x256xf32, #tpu.memory_space<vmem>>, vector<1x8x128xf32>,
    return
  }
  func.func @transform_0(%arg0: i32, %arg1: i32) -> (i32, i32, i32) {
    %c0_i32 = arith.constant 0 : i32
    %0 = arith.minsi %arg1, %c0_i32 : i32
    %c0_i32_0 = arith.constant 0 : i32
    %c0_i32_1 = arith.constant 0 : i32
    return %arg0, %c0_i32_0, %0 : i32, i32, i32
  }
  func.func @transform_1(%arg0: i32, %arg1: i32) -> (i32, i32, i32) {
    %c0_i32 = arith.constant 0 : i32
    %0 = arith.minsi %arg1, %c0_i32 : i32
    %c0_i32_0 = arith.constant 0 : i32
    %c0_i32_1 = arith.constant 0 : i32
    return %arg0, %c0_i32_0, %0 : i32, i32, i32
  }
  func.func @transform_2(%arg0: i32, %arg1: i32) -> (i32, i32) {
    %c0_i32 = arith.constant 0 : i32
    %c0_i32_0 = arith.constant 0 : i32
    %c0_i32_1 = arith.constant 0 : i32
    return %c0_i32, %c0_i32_0 : i32, i32
  }
  func.func @transform_3(%arg0: i32, %arg1: i32) -> (i32, i32) {
    %c0_i32 = arith.constant 0 : i32
    %c0_i32_0 = arith.constant 0 : i32
    %c0_i32_1 = arith.constant 0 : i32
    return %c0_i32, %c0_i32_0 : i32, i32
  }
  func.func @transform_4(%arg0: i32, %arg1: i32) -> (i32, i32, i32) {
    %c0_i32 = arith.constant 0 : i32
    %0 = arith.cmpi eq, %arg1, %c0_i32 : i32
    %c0_i32_0 = arith.constant 0 : i32
    %1 = arith.cmpi eq, %arg1, %c0_i32_0 : i32
    %c-1_i32 = arith.constant -1 : i32
    %2 = arith.cmpi eq, %arg1, %c-1_i32 : i32
    %c2_i32 = arith.constant 2 : i32
    %c1_i32 = arith.constant 1 : i32
    %3 = arith.select %2, %c2_i32, %c1_i32 : i32
    %c3_i32 = arith.constant 3 : i32
    %4 = arith.select %1, %c3_i32, %3 : i32
    %c0_i32_1 = arith.constant 0 : i32
    %5 = arith.select %0, %c0_i32_1, %4 : i32
    %c0_i32_2 = arith.constant 0 : i32
    %c0_i32_3 = arith.constant 0 : i32
    %c0_i32_4 = arith.constant 0 : i32
    return %5, %c0_i32_2, %c0_i32_3 : i32, i32, i32
  }
  func.func @transform_5(%arg0: i32, %arg1: i32) -> (i32, i32, i32) {
    %c0_i32 = arith.constant 0 : i32
    %c0_i32_0 = arith.constant 0 : i32
    return %arg0, %c0_i32, %arg1 : i32, i32, i32
  }
}

</mosaic_0001>

<bundles_post_ra>
// kernel: tpu_custom_call.1
= control target key start
LH: loop header
LB: loop body
LE: loop exit
PB: predicated region body
PF: predicated region fallthrough
CT: control target
= control target key end

     0   :  { %10 = vsyncpa [#allocation4], 0  ;;  %s963_s0 = inlined_call_operand.vmem [shape: f32[2,9,150], index: 0, kind: input, shape index: {}]   ;;  %s964_s1 = inlined_call_operand.vmem [shape: f32[2,9,150], index: 1, kind: input, shape index: {}]   ;;  %s965_s2 = inlined_call_operand.vmem [shape: bf16[16,9], index: 2, kind: input, shape index: {}]   ;;  %s966_s3 = inlined_call_operand.vmem [shape: bf16[16,9], index: 3, kind: input, shape index: {}]   ;;  %s967_s4 = inlined_call_operand.vmem [shape: f32[4,8,256], index: 4, kind: input, shape index: {}]   ;;  %s968_s5 = inlined_call_operand.hbm [shape: f32[2,8,256], index: 5, kind: output, shape index: {}]  }
   0x1   :  { %12 = vsyncpa [#allocation4 + $0x1], 0  ;;  %s846_s18 = smov 0   ;;  %s848_s19 = smov 0  }
   0x2   :  { %s850_s20 = smov 0   ;;  %s852_s21 = smov 0  }
   0x3   :  { %s854_s22 = smov 0   ;;  %s856_s23 = smov 0  }
   0x4 LB: > { %s644_s24 = sadd.s32 4294967295, %s812_s23   ;;  %s645_s25 = sadd.s32 4294967294, %s812_s23   ;;  %s812_s23 = sphi %s856_s23, %s18_s23   ;;  %s808_s22 = sphi %s854_s22, %s975_s22   ;;  %s804_s21 = sphi %s852_s21, %s974_s21   ;;  %s800_s20 = sphi %s850_s20, %s973_s20   ;;  %s796_s19 = sphi %s848_s19, %s972_s19   ;;  %s792_s18 = sphi %s846_s18, %s971_s18  }
   0x5   : > { %s30_s26 = sadd.s32 1, %s808_s22  ;;  %s179_s27 = sadd.s32 1, %s800_s20 }
   0x6   : > { %p32_p0 = scmp.ge.s32.totalorder %s30_s26, 2  ;;  %p189_p1 = scmp.ne.s32.totalorder %s800_s20, %s796_s19 }
   0x7   : > { %p190_p2 = scmp.eq.s32.totalorder %s644_s24, 1  ;;  %p195_p3 = scmp.ne.s32.totalorder %s796_s19, %s792_s18 }
   0x8   : > { %s977_s26 = smov (%p32_p0, %s30_s26), 0  ;;  %p196_p5 = scmp.eq.s32.totalorder %s645_s25, 1 }
   0x9   : > { %p886_p4 = por %p190_p2, %p189_p1  ;;  %s174_s29 = ssub.s32 %s808_s22, %s977_s26 }
   0xa   : > { %p649_p6 = scmp.ge.s32.totalorder %s812_s23, 1  ;;  %p177_p7 = scmp.eq.s32.totalorder %s174_s29, 0 }
   0xb   : > { %p893_p8 = por %p196_p5, %p195_p3  ;;  %p270_p9 = scmp.lt.s32.totalorder %s812_s23, 3 }
   0xc   : > { %s899_s6 = scalar_select %p177_p7, %s800_s20, %s179_s27  }
   0xd   : > { %p271_p10 = pnand %p649_p6, %p270_p9 }
   0xe   : > { %p327_p11 = scmp.lt.s32.totalorder (!%p271_p10), %s804_s21, 1  ;;  %s815_s25 = smov (!%p271_p10), 1  }
   0xf   : > { %274 = sbr.rel (%p271_p10) target bundleno = 307 (0x133), region = 40  ;;  %s321_s27 = sand.u32 (!%p271_p10), 1, %s796_s19  }
  0x10   : > { %s650_s29 = sshll.u32 (!%p271_p10), %s321_s27, 4  ;;  %s517_s17 = scalar_lea.sflag (!%p271_p10), [#allocation4], %s321_s27 }
  0x14   : > { %vm415_vm0 = vcmask 1043456   ;;  %v381_v0 = vlaneseq  ;;  %s328_s7 = scalar_select %p327_p11, %s804_s21, 1  ;;  %vm416_vm1 = vcmask 1044480   ;;  %v814_v2 = vmov 65535   ;;  %v675_v23 = vld [vmem:[%s966_s3] sm:$0xff]  ;;  %v511_v42 = vld [vmem:[%s967_s4 + $0x8] sm:$0xff] }
  0x15   : > { %v417_v3 = vsel %vm415_vm0, 4294967295, %v814_v2  ;;  %vm411_vm3 = vcmask 72704   ;;  %v674_v26 = vld [vmem:[%s965_s2] sm:$0xff] }
  0x16   : > { %v903_v1 = vand.u32 127, %v381_v0  ;;  %s672_s8 = sshll.u32 %s328_s7, 5  ;;  %v418_v7 = vsel %vm416_vm1, %v417_v3, 0  ;;  %s676_s7 = sshll.u32 %s804_s21, 4  ;;  %v510_v45 = vld [vmem:[%s967_s4] sm:$0xff] }
  0x17   : > { %s348_s11 = scalar_lea.vmem %s964_s1, %s672_s8  ;;  %s334_s14 = scalar_lea.vmem %s963_s0, %s672_s8 }
  0x18   : > { %v383_v4 = vadd.s32 128, %v903_v1  ;;  %v377_v5 = vld [vmem:[%s348_s11] sm:$0xff]  ;;  %v379_v6 = vld [vmem:[%s348_s11 + $0x10] sm:$0x1]  ;;  %v374_v11 = vld [vmem:[%s334_s14 + $0x8] sm:$0xff]  ;;  %vm500_vm4 = vcmp.lt.s32.totalorder %v903_v1, 1  ;;  %s530_s10 = scalar_lea.hbm %s968_s5, %s676_s7 }
  0x19   : > { %v373_v8 = vld [vmem:[%s334_s14] sm:$0xff]  ;;  %v400_v9 = vpack.c.bf16 %v379_v6, %v377_v5  ;;  %v375_v10 = vld [vmem:[%s334_s14 + $0x10] sm:$0x1]  ;;  %v376_v12 = vld [vmem:[%s334_s14 + $0x18] sm:$0x1]  ;;  %vm503_vm5 = vcmp.ge.s32.totalorder %v903_v1, 1 }
  0x1a   : > { %vm389_vm2 = vcmp.lt.s32.totalorder %v383_v4, 150  ;;  %v398_v13 = vpack.c.bf16 %v375_v10, %v373_v8  ;;  %v378_v16 = vld [vmem:[%s348_s11 + $0x8] sm:$0xff]  ;;  %v380_v17 = vld [vmem:[%s348_s11 + $0x18] sm:$0x1]  ;;  %s323_s21 = scalar_lea.vmem [#allocation3], %s650_s29  ;;  %s534_s16 = sshll.u32 %s530_s10, 4  ;;  %s535_s16 = int_to_ptr.hbm [resolvable:$true] %s534_s16 }
  0x1b   : > { %v391_v14 = vsel %vm389_vm2, %v374_v11, 0.0  ;;  %v393_v15 = vsel %vm389_vm2, %v376_v12, 0.0  ;;  %v420_v18 = vand.u32 %v418_v7, %v400_v9  ;;  %v395_v20 = vsel %vm389_vm2, %v378_v16, 0.0  ;;  %s532_s15 = sshll.u32 %s323_s21, 4  ;;  %s748_s24 = sshra.s32 %s535_s16, 4  ;;  %s533_s15 = int_to_ptr.vmem [resolvable:$true] %s532_s15  ;;  %s749_s24 = int_to_ptr.hbm [resolvable:$true] %s748_s24 }
  0x1c   : > { %v399_v19 = vpack.c.bf16 %v393_v15, %v391_v14  ;;  %v397_v21 = vsel %vm389_vm2, %v380_v17, 0.0  ;;  %v462_v22 = vand.u32 %v418_v7, %v398_v13  ;;  %s754_s29 = scalar_lea.hbm %s968_s5, 32  ;;  %p755_p1 = scmp.lt.s32.totalorder %s749_s24, %s968_s5 }
  0x1d   : > { %v401_v24 = vpack.c.bf16 %v397_v21, %v395_v20  ;;  %432 = vmatpush.bf16.msra.mxu0 %v420_v18 }
  0x1e   : > { %v465_v25 = vand.u32 %v418_v7, %v399_v19  ;;  %474 = vmatpush.bf16.msra.mxu2 %v462_v22 }
  0x1f   : > { %v423_v27 = vand.u32 %v418_v7, %v401_v24 }
  0x20   : > { %488 = vmatpush.bf16.msra.mxu3 %v465_v25  ;;  %659 = vmatmul.msk.bf16.vlgmr.msra.gmra.mxu0 %vm411_vm3, %v675_v23 }
  0x21   : > { %446 = vmatpush.bf16.msra.mxu1 %v423_v27  ;;  %665 = vmatmul.msk.bf16.vlgmr.msra.gmra.mxu2 %vm411_vm3, %v674_v26 }
  0x23   : > { %666 = vmatmul.msk.bf16.vlgmr.msra.gmra.mxu3 %vm411_vm3, %v674_v26 }
  0x24   : > { %660 = vmatmul.msk.bf16.vlgmr.msra.gmra.mxu1 %vm411_vm3, %v675_v23 }
  0x9d   : > { %v434_v28 = vpop.f32.mrf.mxu0 }
  0xa1   : > { %v448_v30 = vpop.f32.mrf.mxu1 }
  0xa4   : > { %v476_v29 = vpop.f32.mrf.mxu2 }
  0xa5   : > { %v477_v31 = vadd.f32 %v476_v29, %v434_v28  ;;  %v436_v34 = vpop.f32.mrf.mxu0 }
  0xa6   : > { %v490_v32 = vpop.f32.mrf.mxu3 }
  0xa7   : > { %v491_v33 = vadd.f32 %v490_v32, %v448_v30 }
  0xa9   : > { %v450_v37 = vpop.f32.mrf.mxu1 }
  0xac   : > { %v478_v35 = vpop.f32.mrf.mxu2 }
  0xad   : > { %v479_v36 = vadd.f32 %v478_v35, %v436_v34 }
  0xae   : > { %v492_v38 = vpop.f32.mrf.mxu3 }
  0xaf   : > { %496 = vrot.lane.b32.xlu0 %v479_v36, %s815_s25  ;;  %v493_v39 = vadd.f32 %v492_v38, %v450_v37 }
  0xb7   : > { %498 = vrot.lane.b32.xlu0 %v493_v39, %s815_s25  ;;  %s750_s25 = scalar_lea.hbm %s749_s24, 16 }
  0xb8   : > { %p751_p12 = scmp.ne.s32.totalorder %s749_s24, %s750_s25  ;;  %p756_p2 = scmp.lt.s32.totalorder %s754_s29, %s750_s25 }
  0xba   : > { %p752_p13 = pnand %p751_p12, %p886_p4  ;;  %p757_p3 = por %p756_p2, %p755_p1 }
  0xbc   : > { %p753_p0 = pneg %p752_p13 }
  0xbe   : > { %p758_p5 = pnand %p757_p3, %p753_p0 }
 0x121   : > { %v497_v40 = vpop.permute.xlu0 %496 }
 0x129   : > { %v499_v41 = vpop.permute.xlu0 %498 }
 0x12a   : > { %v501_v43 = vsel %vm500_vm4, %v497_v40, %v499_v41  ;;  %v502_v44 = vsel %vm500_vm4, %v499_v41, %v497_v40 }
 0x12b   : > { %v504_v46 = vsel %vm503_vm5, %v502_v44, 0.0  ;;  %v508_v47 = vadd.f32 %v501_v43, %v491_v33 }
 0x12c   : > { %v505_v48 = vadd.f32 %v504_v46, %v477_v31 }
 0x12d   : > { %v514_v49 = vmul.f32 %v511_v42, %v508_v47 }
 0x12e   : > { %v512_v50 = vmul.f32 %v510_v45, %v505_v48 }
 0x12f   : > { %515 = vst [vmem:[%s323_s21 + $0x8] sm:$0xff] %v514_v49 }
 0x130   : > { %513 = vst [vmem:[%s323_s21] sm:$0xff] %v512_v50 }
 0x131   : > { %761 = shalt.err (!%p758_p5)
}
 0x132   : > { %677 = dma.vmem_to_hbm [thread:$0]  (%p886_p4), %s533_s15, 256, %s535_s16, %s517_s17  }
 0x133 PF: > { %p683_p6 = scmp.ge.s32.totalorder %s812_s23, 2  ;;  %s546_s27 = sand.u32 1, %s792_s18  }
 0x134   : > { %s547_s11 = scalar_lea.sflag [#allocation4], %s546_s27 }
 0x135   : > { %p680_p7 = pnand %p683_p6, %p893_p8 }
 0x137   : > { %p681_p9 = pneg %p680_p7 }
 0x139   : > { %787 = dma.done.wait (%p681_p9), %s547_s11, 256  }
 0x13a   : > { %789 = vsyncadd (%p681_p9), %s547_s11, 4294967040  ;;  %s18_s23 = sadd.s32 1, %s812_s23   ;;  %s971_s18 = smov %s796_s19 }
 0x13b   : > { %p15_p10 = scmp.ge.s32.totalorder %s18_s23, 4   ;;  %s972_s19 = smov %s800_s20 }
 0x13c   : > { %s973_s20 = smov %s899_s6  ;;  %s974_s21 = smov %s808_s22 }
 0x13d   : > { %s975_s22 = smov %s977_s26  ;;  %17 = sbr.rel (!%p15_p10) target bundleno = 4 (0x4), region = 85 }
 0x142   :  { %553 = vsyncpa [#allocation4], 1 }
 0x143   :  { %555 = vsyncpa [#allocation4 + $0x1], 1 }

</bundles_post_ra>
